<compile_context>
chip_gen: v7x
topology: tpu7x:2x2x1
jax: 0.10.0
libtpu: 0.0.40
codegen_flags: <defaults>
</compile_context>

<pallas_src>
import jax
import jax.numpy as jnp
from jax.experimental import pallas as pl
from jax.experimental.pallas import tpu as pltpu


def _round_up(n, m):
    return ((n + m - 1) // m) * m


def _reducer_kernel(x_ref, w1_ref, b1_ref, w2_ref, b2_ref, o_ref):
    # fc1: (TB, F)f32 -> bf16 @ (F, H)bf16, f32 accumulate on the MXU.
    h = jnp.dot(x_ref[...].astype(jnp.bfloat16), w1_ref[...],
                preferred_element_type=jnp.float32)
    # bias + ReLU in f32 (v5e VPU has no bf16).
    h = jnp.maximum(h + b1_ref[...], 0.0)
    # TODO(synk): dropout implemented with eval-mode semantics (identity);
    # training-mode dropout would use pltpu.prng_seed / pltpu.prng_random_bits
    # masking with 1/(1-p) scaling.
    # fc2: (TB, H)bf16 @ (H, O)bf16, f32 accumulate.
    y = jnp.dot(h.astype(jnp.bfloat16), w2_ref[...],
                preferred_element_type=jnp.float32)
    o_ref[...] = (y + b2_ref[...]).astype(o_ref.dtype)


def prepare_params(w1, b1, w2, b2):
    """One-time parameter preparation (hoisted off the per-call path):
    weights -> bf16 for the MXU, biases -> f32 (1, features) row vectors.
    w1: (F, 64), b1: (64,) or (1, 64); w2: (64, O), b2: (O,) or (1, O)."""
    return (w1.astype(jnp.bfloat16),
            jnp.asarray(b1, jnp.float32).reshape(1, -1),
            w2.astype(jnp.bfloat16),
            jnp.asarray(b2, jnp.float32).reshape(1, -1))


def embedding_reducer_forward(x, w1b, b1f, w2b, b2f, *, block_b=2048):
    """x: (B, hf_embedding_size*5) f32; prepared params from prepare_params().
    Returns (B, output_size) f32."""
    B, F = x.shape
    H = w1b.shape[1]
    O = w2b.shape[1]

    # Batch tile: sublane-aligned, large enough to amortize per-step overhead,
    # but small enough that the grid has >=2 steps (v7x megacore) when B allows.
    TB = max(8, min(block_b, _round_up(pl.cdiv(B, 2), 8)))
    grid = (pl.cdiv(B, TB),)

    # VMEM note: at TB=2048 the double-buffered f32 x tile is ~1.3 MiB/buf and
    # the (unpadded) weights ~25 KiB total -> far under every generation's
    # scoped VMEM default, so no vmem_limit_bytes override needed.
    # Ragged last tile: OOB rows are never written (Pallas masks the partial
    # output block) and each output row depends only on its own x row, so the
    # garbage tail in the loaded block is harmless.
    out = pl.pallas_call(
        _reducer_kernel,
        out_shape=jax.ShapeDtypeStruct((B, O), jnp.float32),
        grid_spec=pltpu.PrefetchScalarGridSpec(
            num_scalar_prefetch=0,
            grid=grid,
            in_specs=[
                pl.BlockSpec((TB, F), lambda i: (i, 0)),   # x: tiled over batch
                pl.BlockSpec((F, H), lambda i: (0, 0)),    # w1: VMEM-resident
                pl.BlockSpec((1, H), lambda i: (0, 0)),    # b1: VMEM-resident
                pl.BlockSpec((H, O), lambda i: (0, 0)),    # w2: VMEM-resident
                pl.BlockSpec((1, O), lambda i: (0, 0)),    # b2: VMEM-resident
            ],
            out_specs=pl.BlockSpec((TB, O), lambda i: (i, 0)),
        ),
        compiler_params=pltpu.CompilerParams(
            dimension_semantics=("parallel",),
        ),
    )(x, w1b, b1f, w2b, b2f)
    return out


if __name__ == "__main__":
    # Module hyperparameters (small, consistent with the PyTorch __init__):
    hf_embedding_size = 32          # -> fc1 in_features = 32 * 5 = 160
    output_size = 16
    batch = 8

    in_features = hf_embedding_size * 5
    hidden = 64

    key = jax.random.PRNGKey(0)
    kx, kw1, kb1, kw2, kb2 = jax.random.split(key, 5)

    # Deterministic synthetic parameters (PyTorch-Linear-like uniform init),
    # stored as (in, out) so the kernel does x @ W + b.
    x = jax.random.normal(kx, (batch, in_features), dtype=jnp.float32)
    bound1 = 1.0 / (in_features ** 0.5)
    w1 = jax.random.uniform(kw1, (in_features, hidden), jnp.float32, -bound1, bound1)
    b1 = jax.random.uniform(kb1, (1, hidden), jnp.float32, -bound1, bound1)
    bound2 = 1.0 / (hidden ** 0.5)
    w2 = jax.random.uniform(kw2, (hidden, output_size), jnp.float32, -bound2, bound2)
    b2 = jax.random.uniform(kb2, (1, output_size), jnp.float32, -bound2, bound2)

    # One-time parameter prep (off the per-call path).
    w1b, b1f, w2b, b2f = prepare_params(w1, b1, w2, b2)

    out = embedding_reducer_forward(x, w1b, b1f, w2b, b2f)
    out = jax.block_until_ready(out)

    assert out.shape == (batch, output_size)
    assert out.dtype == jnp.float32

    # 1) Tight check against a reference with the same bf16-input /
    #    f32-accumulate numerics as the kernel (eval-mode dropout = identity).
    xb = x.astype(jnp.bfloat16).astype(jnp.float32)
    w1r = w1.astype(jnp.bfloat16).astype(jnp.float32)
    w2r = w2.astype(jnp.bfloat16).astype(jnp.float32)
    h_ref = jnp.maximum(xb @ w1r + b1, 0.0)
    ref_bf16 = h_ref.astype(jnp.bfloat16).astype(jnp.float32) @ w2r + b2
    assert jnp.allclose(out, ref_bf16, atol=5e-3, rtol=5e-3)

    # 2) Looser check against the pure-f32 PyTorch-equivalent forward, to bound
    #    the bf16 drift vs the original nn.Module semantics.
    ref_f32 = jnp.maximum(x @ w1 + b1, 0.0) @ w2 + b2
    assert jnp.allclose(out, ref_f32, atol=2e-2, rtol=2e-2)

    print("KERNEL_OK")
</pallas_src>

<mosaic_0001>
module attributes {stable_mosaic.version = 11 : i64} {
  func.func @_reducer_kernel(%arg0: i32, %arg1: memref<8x160xf32, #tpu.memory_space<vmem>>, %arg2: memref<160x64xbf16, #tpu.memory_space<vmem>>, %arg3: memref<1x64xf32, #tpu.memory_space<vmem>>, %arg4: memref<64x16xbf16, #tpu.memory_space<vmem>>, %arg5: memref<1x16xf32, #tpu.memory_space<vmem>>, %arg6: memref<8x16xf32, #tpu.memory_space<vmem>>) attributes {dimension_semantics = [#tpu.dimension_semantics<parallel>], iteration_bounds = array<i64: 1>, scalar_prefetch = 0 : i64, scratch_operands = 0 : i64, tpu.core_type = #tpu.core_type<tc>, window_params = [{transform_indices = @transform_0, window_bounds = array<i64: 8, 160>}, {pipeline_mode = #tpu.pipeline_mode<synchronous>, transform_indices = @transform_1, window_bounds = array<i64: 160, 64>}, {pipeline_mode = #tpu.pipeline_mode<synchronous>, transform_indices = @transform_2, window_bounds = array<i64: 1, 64>}, {pipeline_mode = #tpu.pipeline_mode<synchronous>, transform_indices = @transform_3, window_bounds = array<i64: 64, 16>}, {pipeline_mode = #tpu.pipeline_mode<synchronous>, transform_indices = @transform_4, window_bounds = array<i64: 1, 16>}, {transform_indices = @transform_5, window_bounds = array<i64: 8, 16>}]} {
    %c0 = arith.constant 0 : index
    %c0_0 = arith.constant 0 : index
    %0 = vector.load %arg1[%c0, %c0_0] : memref<8x160xf32, #tpu.memory_space<vmem>>, vector<8x160xf32>
    %1 = arith.truncf %0 : vector<8x160xf32> to vector<8x160xbf16>
    %c0_1 = arith.constant 0 : index
    %c0_2 = arith.constant 0 : index
    %2 = vector.load %arg2[%c0_1, %c0_2] : memref<160x64xbf16, #tpu.memory_space<vmem>>, vector<160x64xbf16>
    %cst = arith.constant dense<0.000000e+00> : vector<8x64xf32>
    %3 = tpu.matmul %1, %2, %cst {dimension_numbers = #tpu.dot_dimension_numbers<[1], [0], [0], [1], [0, 0, 1, 1], [], []>} : vector<8x160xbf16>, vector<160x64xbf16>, vector<8x64xf32> -> vector<8x64xf32>
    %c0_3 = arith.constant 0 : index
    %c0_4 = arith.constant 0 : index
    %4 = vector.load %arg3[%c0_3, %c0_4] : memref<1x64xf32, #tpu.memory_space<vmem>>, vector<1x64xf32>
    %5 = vector.broadcast %4 : vector<1x64xf32> to vector<8x64xf32>
    %6 = arith.addf %3, %5 : vector<8x64xf32>
    %cst_5 = arith.constant 0.000000e+00 : f32
    %7 = vector.broadcast %cst_5 : f32 to vector<8x64xf32>
    %8 = arith.maximumf %6, %7 : vector<8x64xf32>
    %9 = arith.truncf %8 : vector<8x64xf32> to vector<8x64xbf16>
    %c0_6 = arith.constant 0 : index
    %c0_7 = arith.constant 0 : index
    %10 = vector.load %arg4[%c0_6, %c0_7] : memref<64x16xbf16, #tpu.memory_space<vmem>>, vector<64x16xbf16>
    %cst_8 = arith.constant dense<0.000000e+00> : vector<8x16xf32>
    %11 = tpu.matmul %9, %10, %cst_8 {dimension_numbers = #tpu.dot_dimension_numbers<[1], [0], [0], [1], [0, 0, 1, 1], [], []>} : vector<8x64xbf16>, vector<64x16xbf16>, vector<8x16xf32> -> vector<8x16xf32>
    %c0_9 = arith.constant 0 : index
    %c0_10 = arith.constant 0 : index
    %12 = vector.load %arg5[%c0_9, %c0_10] : memref<1x16xf32, #tpu.memory_space<vmem>>, vector<1x16xf32>
    %13 = vector.broadcast %12 : vector<1x16xf32> to vector<8x16xf32>
    %14 = arith.addf %11, %13 : vector<8x16xf32>
    %c0_11 = arith.constant 0 : index
    %c0_12 = arith.constant 0 : index
    %15 = vector.load %arg6[%c0_11, %c0_12] : memref<8x16xf32, #tpu.memory_space<vmem>>, vector<8x16xf32>
    tpu.vector_store %arg6[%c0_11, %c0_12], %14 {strides = array<i32>} : memref<8x16xf32, #tpu.memory_space<vmem>>, vector<8x16xf32>,
    return
  }
  func.func @transform_0(%arg0: i32) -> (i32, i32) {
    %c0_i32 = arith.constant 0 : i32
    %c0_i32_0 = arith.constant 0 : i32
    return %arg0, %c0_i32 : i32, i32
  }
  func.func @transform_1(%arg0: i32) -> (i32, i32) {
    %c0_i32 = arith.constant 0 : i32
    %c0_i32_0 = arith.constant 0 : i32
    %c0_i32_1 = arith.constant 0 : i32
    return %c0_i32, %c0_i32_0 : i32, i32
  }
  func.func @transform_2(%arg0: i32) -> (i32, i32) {
    %c0_i32 = arith.constant 0 : i32
    %c0_i32_0 = arith.constant 0 : i32
    %c0_i32_1 = arith.constant 0 : i32
    return %c0_i32, %c0_i32_0 : i32, i32
  }
  func.func @transform_3(%arg0: i32) -> (i32, i32) {
    %c0_i32 = arith.constant 0 : i32
    %c0_i32_0 = arith.constant 0 : i32
    %c0_i32_1 = arith.constant 0 : i32
    return %c0_i32, %c0_i32_0 : i32, i32
  }
  func.func @transform_4(%arg0: i32) -> (i32, i32) {
    %c0_i32 = arith.constant 0 : i32
    %c0_i32_0 = arith.constant 0 : i32
    %c0_i32_1 = arith.constant 0 : i32
    return %c0_i32, %c0_i32_0 : i32, i32
  }
  func.func @transform_5(%arg0: i32) -> (i32, i32) {
    %c0_i32 = arith.constant 0 : i32
    %c0_i32_0 = arith.constant 0 : i32
    return %arg0, %c0_i32 : i32, i32
  }
}

</mosaic_0001>

<bundles_post_ra>
// kernel: tpu_custom_call.1
= control target key start
LH: loop header
LB: loop body
LE: loop exit
PB: predicated region body
PF: predicated region fallthrough
CT: control target
= control target key end

     0   :  { %v335_v1 = vmov 0   ;;  %v336_v3 = vmov 0.0   ;;  %vm113_vm0 = vcmask 261120   ;;  %s435_s0 = inlined_call_operand.vmem [shape: f32[8,160], index: 0, kind: input, shape index: {}]   ;;  %s436_s1 = inlined_call_operand.vmem [shape: bf16[160,64], index: 1, kind: input, shape index: {}]   ;;  %s437_s2 = inlined_call_operand.vmem [shape: f32[1,64], index: 2, kind: input, shape index: {}]   ;;  %s438_s3 = inlined_call_operand.vmem [shape: bf16[64,16], index: 3, kind: input, shape index: {}]   ;;  %s439_s4 = inlined_call_operand.vmem [shape: f32[1,16], index: 4, kind: input, shape index: {}]   ;;  %s440_s5 = inlined_call_operand.hbm [shape: f32[8,16], index: 5, kind: output, shape index: {}]  }
   0x1   :  { %v297_v0 = vld [vmem:[%s436_s1] sm:$0xff]   ;;  %117 = vmatprep.subr.bf16.mxu0 %v335_v1  ;;  %v298_v2 = vld [vmem:[%s436_s1 + $0x8] sm:$0xff]   ;;  %281 = vmatprep.subr.bf16.mxu1 %v336_v3  ;;  %v299_v4 = vld [vmem:[%s436_s1 + $0x10] sm:$0xff]  }
   0x2   :  { %118 = vmatpush1.bf16.msra.mxu0 %v297_v0  ;;  %v300_v5 = vld [vmem:[%s436_s1 + $0x18] sm:$0xff]   ;;  %v23_v6 = vld [vmem:[%s435_s0 + $0x8] sm:$0xff]  ;;  %v307_v8 = vld [vmem:[%s438_s3] sm:$0xff]  }
   0x3   :  { %119 = vmatprep.subr.bf16.mxu0 %v335_v1  ;;  %v25_v7 = vpack.c.bf16 %v23_v6, %v23_v6  ;;  %v308_v9 = vld [vmem:[%s438_s3 + $0x8] sm:$0xff]   ;;  %282 = vmatpush3.bf16.msra.mxu1 %v307_v8  ;;  %v301_v10 = vld [vmem:[%s436_s1 + $0x20] sm:$0xff]  }
   0x4   :  { %283 = vmatprep.subr.bf16.mxu1 %v336_v3 }
   0x5   :  { %269 = vmatprep.mubr.msk.bf16.mxu0 %vm113_vm0, %v25_v7 }
   0x6   :  { %120 = vmatpush1.bf16.msra.mxu0 %v298_v2 }
   0x7   :  { %121 = vmatprep.subr.bf16.mxu0 %v335_v1 }
   0xa   :  { %122 = vmatpush1.bf16.msra.mxu0 %v299_v4 }
   0xb   :  { %123 = vmatprep.subr.bf16.mxu0 %v335_v1 }
   0xe   :  { %124 = vmatpush1.bf16.msra.mxu0 %v300_v5 }
   0xf   :  { %10 = vsyncpa [#allocation3], 0  ;;  %125 = vmatprep.subr.bf16.mxu0 %v335_v1  ;;  %284 = vmatpush3.bf16.msra.mxu1 %v308_v9  ;;  %v302_v11 = vld [vmem:[%s436_s1 + $0x28] sm:$0xff]   ;;  %v303_v12 = vld [vmem:[%s436_s1 + $0x30] sm:$0xff]   ;;  %vm337_vm1 = vmmov 0   ;;  %vm198_vm2 = vcmask 523264  }
  0x10   :  { %285 = vmatprep.subr.bf16.mxu1 %v336_v3  ;;  %v304_v13 = vld [vmem:[%s436_s1 + $0x38] sm:$0xff]   ;;  %v305_v14 = vld [vmem:[%s436_s1 + $0x40] sm:$0xff]   ;;  %v306_v15 = vld [vmem:[%s436_s1 + $0x48] sm:$0xff]   ;;  %289 = vmatprep.mubr.msk.bf16.mxu1 %vm337_vm1, %v336_v3  ;;  %vm242_vm3 = vcmask 130048  }
  0x11   :  { %v22_v16 = vld [vmem:[%s435_s0] sm:$0xff]  ;;  %v309_v18 = vld [vmem:[%s438_s3 + $0x10] sm:$0xff]   ;;  %v310_v19 = vld [vmem:[%s438_s3 + $0x18] sm:$0xff]   ;;  %s338_s3 = smov [#allocation2]  }
  0x12   :  { %126 = vmatpush1.bf16.msra.mxu0 %v301_v10  ;;  %v24_v17 = vpack.c.bf16 %v22_v16, %v22_v16  ;;  %v258_v20 = vld [vmem:[%s437_s2] ss:$0 sm:$0xff]  ;;  %s250_s27 = sshll.u32 %s338_s3, 4  ;;  %s251_s27 = int_to_ptr.vmem [resolvable:$true] %s250_s27 }
  0x13   :  { %127 = vmatprep.subr.bf16.mxu0 %v335_v1  ;;  %286 = vmatpush3.bf16.msra.mxu1 %v309_v18  ;;  %v270_v28 = vld [vmem:[%s439_s4] ss:$0 sm:$0xff]  ;;  %s311_s2 = scalar_lea.vmem %s251_s27, 128  ;;  %p316_p1 = scmp.lt.s32.totalorder %s251_s27, %s251_s27 }
  0x14   :  { %287 = vmatprep.subr.bf16.mxu1 %v336_v3  ;;  %p312_p0 = scmp.ne.s32.totalorder %s251_s27, %s311_s2  ;;  %p317_p2 = scmp.lt.s32.totalorder %s311_s2, %s311_s2 }
  0x16   :  { %128 = vmatpush1.bf16.msra.mxu0 %v302_v11  ;;  %p318_p3 = por %p317_p2, %p316_p1 }
  0x17   :  { %129 = vmatprep.subr.bf16.mxu0 %v335_v1  ;;  %288 = vmatpush3.bf16.msra.mxu1 %v310_v19 }
  0x18   :  { %p319_p4 = pnand %p318_p3, %p312_p0 }
  0x1a   :  { %130 = vmatpush1.bf16.msra.mxu0 %v303_v12 }
  0x1b   :  { %131 = vmatprep.subr.bf16.mxu0 %v335_v1 }
  0x1e   :  { %132 = vmatpush1.bf16.msra.mxu0 %v304_v13 }
  0x1f   :  { %133 = vmatprep.subr.bf16.mxu0 %v335_v1 }
  0x22   :  { %134 = vmatpush1.bf16.msra.mxu0 %v305_v14 }
  0x23   :  { %135 = vmatprep.subr.bf16.mxu0 %v335_v1 }
  0x26   :  { %136 = vmatpush1.bf16.msra.mxu0 %v306_v15 }
  0x29   :  { %150 = vmatmul.mubr.bf16.vlgmr.msra.gmra.mrb[0].mxu0 %v24_v17 }
  0xfc   :  { %v151_v21 = vpop.f32.mrb[0].mxu0 }
  0xfd   :  { %v152_v22 = vadd.f32 %v258_v20, %v151_v21  ;;  %v153_v23 = vpop.f32.mrb[1].mxu0 }
  0xfe   :  { %v154_v24 = vpop.f32.mrb[2].mxu0 }
  0xff   :  { %v157_v25 = vmax.f32 %v152_v22, 0.0  ;;  %v155_v26 = vpop.f32.mrb[3].mxu0 }
 0x101   :  { %v158_v27 = vpack.c.bf16 %v157_v25, %v157_v25 }
 0x103   :  { %290 = vmatmul.mubr.msk.bf16.vlgmr.msra.gmra.mrb[0].mxu1 %vm198_vm2, %v158_v27 }
 0x1d6   :  { %v236_v29 = vpop.f32.mrb[0].mxu1 }
 0x1d7   :  { %v237_v30 = vadd.f32 %v270_v28, %v236_v29  ;;  %v291_v31 = vpop.f32.mrb[1].mxu1 }
 0x1d8   :  { %v239_v32 = vpop.f32.mrb[2].mxu1 }
 0x1d9   :  { %v292_v33 = vpop.f32.mrb[3].mxu1  ;;  %243 = vst.msk [vmem:[#allocation2] sm:$0xff] %vm242_vm3, %v237_v30 }
 0x1da   :  { %322 = shalt.err (!%p319_p4)
}
 0x1db   :  { %s323_s4 = scalar_lea.hbm %s440_s5, 128 }
 0x1dc   :  { %p324_p5 = scmp.ne.s32.totalorder %s440_s5, %s323_s4  ;;  %p327_p6 = scmp.lt.u32.totalorder %s323_s4, %s440_s5 }
 0x1de   :  { %p329_p7 = pnand %p327_p6, %p324_p5 }
 0x1e0   :  { %332 = shalt.err (!%p329_p7)
}
 0x1e1   :  { %253 = dma.vmem_to_hbm [thread:$0]  %s251_s27, 128, %s440_s5, [#allocation3]  }
 0x1e2   :  { %333 = dma.done.wait [#allocation3], 128  }
 0x1e3   :  { %334 = vsyncadd [#allocation3], 4294967168 }
 0x1e4   :  { %257 = vsyncpa [#allocation3], 1 }

</bundles_post_ra>
